<compile_context>
chip_gen: v7x
topology: tpu7x:2x2x1
jax: 0.10.0
libtpu: 0.0.40
codegen_flags: <defaults>
</compile_context>

<pallas_src>
import jax
import jax.numpy as jnp
from jax.experimental import pallas as pl
from jax.experimental.pallas import tpu as pltpu


# ----------------------------------------------------------------------------
# Pallas kernel
# ----------------------------------------------------------------------------

def _identity_kernel(x_ref, o_ref):
    # Whole-tile copy: one vector load + one lane-dense vector store per vreg.
    o_ref[...] = x_ref[...]


# ----------------------------------------------------------------------------
# Wrapper
# ----------------------------------------------------------------------------

_LANE = 128


def _pick_row_block(rows, itemsize):
    """Largest row-tile that is a multiple of 8, divides `rows`, and keeps a
    single (block_rows, 128) buffer under ~2 MiB (double-buffered in + out
    still leaves huge VMEM headroom on all generations)."""
    cap = max(8, (2 << 20) // (_LANE * itemsize))
    if rows <= cap:
        return rows                      # single grid step, full-array block
    best = None
    d = 8
    while d <= cap:
        if rows % d == 0:
            best = d
        d += 8
    return best if best is not None else rows   # full block is always legal


def identity(x):
    """Identity forward pass via a Pallas copy kernel.  Preserves shape/dtype."""
    orig_shape = x.shape
    total = x.size
    itemsize = jnp.dtype(x.dtype).itemsize

    if total % _LANE == 0:
        # Lane-dense 2-D view: last dim = 128 -> unmasked full-lane stores.
        rows = total // _LANE
        x2d = x.reshape(rows, _LANE)
        block_rows = _pick_row_block(rows, itemsize)
        grid = (rows // block_rows,)
        out2d = pl.pallas_call(
            _identity_kernel,
            out_shape=jax.ShapeDtypeStruct((rows, _LANE), x.dtype),
            grid=grid,
            in_specs=[pl.BlockSpec((block_rows, _LANE), lambda i: (i, 0))],
            out_specs=pl.BlockSpec((block_rows, _LANE), lambda i: (i, 0)),
            compiler_params=pltpu.CompilerParams(
                dimension_semantics=("parallel",)),
        )(x2d)
        return out2d.reshape(orig_shape)

    # Fallback for sizes not divisible by 128: single full-array block
    # (block shape equal to the full array dims is always legal).
    last = orig_shape[-1] if x.ndim >= 1 else 1
    lead = max(1, total // max(1, last))
    x2d = x.reshape(lead, last) if x.ndim >= 1 else x.reshape(1, 1)
    out2d = pl.pallas_call(
        _identity_kernel,
        out_shape=jax.ShapeDtypeStruct(x2d.shape, x.dtype),
        grid=(1,),
        in_specs=[pl.BlockSpec(x2d.shape, lambda i: (0, 0))],
        out_specs=pl.BlockSpec(x2d.shape, lambda i: (0, 0)),
    )(x2d)
    return out2d.reshape(orig_shape)


# ----------------------------------------------------------------------------
# Forward (matches the PyTorch module: Identity.forward(x) -> x)
# ----------------------------------------------------------------------------

def identity_forward(x):
    return identity(x)


if __name__ == "__main__":
    key = jax.random.PRNGKey(0)
    # Small shape consistent with the module (Identity accepts any tensor).
    x = jax.random.normal(key, (2, 4, 16, 16), jnp.float32)

    fwd = jax.jit(identity_forward)
    out = jax.block_until_ready(fwd(x))

    assert out.shape == x.shape, (out.shape, x.shape)
    assert out.dtype == x.dtype, (out.dtype, x.dtype)
    assert bool(jnp.all(out == x)), "identity output mismatch"

    # Also exercise a shape whose element count is not a multiple of 128.
    key2 = jax.random.PRNGKey(1)
    y = jax.random.normal(key2, (3, 5, 7), jnp.float32)
    out_y = jax.block_until_ready(jax.jit(identity_forward)(y))
    assert out_y.shape == y.shape and bool(jnp.all(out_y == y))

    print("KERNEL_OK")
</pallas_src>

<mosaic_0001>
module attributes {stable_mosaic.version = 11 : i64} {
  func.func @_identity_kernel(%arg0: i32, %arg1: memref<16x128xf32, #tpu.memory_space<vmem>>, %arg2: memref<16x128xf32, #tpu.memory_space<vmem>>) attributes {dimension_semantics = [#tpu.dimension_semantics<parallel>], iteration_bounds = array<i64: 1>, scalar_prefetch = 0 : i64, scratch_operands = 0 : i64, tpu.core_type = #tpu.core_type<tc>, window_params = [{transform_indices = @transform_0, window_bounds = array<i64: 16, 128>}, {transform_indices = @transform_1, window_bounds = array<i64: 16, 128>}]} {
    %c0 = arith.constant 0 : index
    %c0_0 = arith.constant 0 : index
    %0 = vector.load %arg1[%c0, %c0_0] : memref<16x128xf32, #tpu.memory_space<vmem>>, vector<16x128xf32>
    %c0_1 = arith.constant 0 : index
    %c0_2 = arith.constant 0 : index
    %1 = vector.load %arg2[%c0_1, %c0_2] : memref<16x128xf32, #tpu.memory_space<vmem>>, vector<16x128xf32>
    tpu.vector_store %arg2[%c0_1, %c0_2], %0 {strides = array<i32>} : memref<16x128xf32, #tpu.memory_space<vmem>>, vector<16x128xf32>,
    return
  }
  func.func @transform_0(%arg0: i32) -> (i32, i32) {
    %c0_i32 = arith.constant 0 : i32
    %c0_i32_0 = arith.constant 0 : i32
    return %arg0, %c0_i32 : i32, i32
  }
  func.func @transform_1(%arg0: i32) -> (i32, i32) {
    %c0_i32 = arith.constant 0 : i32
    %c0_i32_0 = arith.constant 0 : i32
    return %arg0, %c0_i32 : i32, i32
  }
}

</mosaic_0001>

<bundles_post_ra>
// kernel: identity_forward.1
= control target key start
LH: loop header
LB: loop body
LE: loop exit
PB: predicated region body
PF: predicated region fallthrough
CT: control target
= control target key end

     0   :  { %s38_s0 = inlined_call_operand.vmem [shape: f32[16,128], index: 0, kind: input, shape index: {}]   ;;  %s39_s1 = inlined_call_operand.vmem [shape: f32[16,128], index: 1, kind: output, shape index: {}]  }
   0x1   :  { %v8_v0 = vld [vmem:[%s38_s0] sm:$0xff]  ;;  %v9_v1 = vld [vmem:[%s38_s0 + $0x8] sm:$0xff] }
   0x2   :  { %10 = vst [vmem:[%s39_s1] sm:$0xff] %v8_v0  ;;  %11 = vst [vmem:[%s39_s1 + $0x8] sm:$0xff] %v9_v1 }

</bundles_post_ra>
